<compile_context>
chip_gen: v7x
topology: tpu7x:2x2x1
jax: 0.10.0
libtpu: 0.0.40
codegen_flags: <defaults>
</compile_context>

<pallas_src>
import jax
import jax.numpy as jnp
from jax.experimental import pallas as pl
from jax.experimental.pallas import tpu as pltpu

# Lane-dense tile geometry (works for f32 and bf16).
_LANE_W = 1024          # last dim: 8 vregs wide, multiple of 128
_TILE_R = 512           # row tile: 512 x 1024 f32 = 2 MiB per buffer
_VMEM_LIMIT = 32 * 1024 * 1024  # explicit scoped-VMEM budget (safe on v5e/v6e/v7x)


def _abs_kernel(x_ref, o_ref):
    # elementwise |x| on the whole VMEM tile (VPU)
    o_ref[...] = jnp.abs(x_ref[...])


def _abs_lane_dense(x: jnp.ndarray) -> jnp.ndarray:
    """|x| via a tiled, pipelined, lane-dense Pallas kernel.

    Shape-agnostic: flattens, pads to a (rows, _LANE_W) slab, runs the
    kernel over row tiles, then slices/reshapes back.
    """
    orig_shape = x.shape
    flat = x.reshape(-1)
    n = flat.shape[0]
    if n == 0:
        return x

    rows = pl.cdiv(n, _LANE_W)
    padded = rows * _LANE_W
    if padded != n:
        flat = jnp.pad(flat, (0, padded - n))
    x2d = flat.reshape(rows, _LANE_W)

    # Block rows: full extent if small, otherwise a (8,128)-aligned tile.
    tile_r = rows if rows < _TILE_R else _TILE_R
    grid = (pl.cdiv(rows, tile_r),)

    itemsize = jnp.dtype(x.dtype).itemsize
    out2d = pl.pallas_call(
        _abs_kernel,
        out_shape=jax.ShapeDtypeStruct((rows, _LANE_W), x.dtype),
        grid_spec=pl.GridSpec(
            grid=grid,
            in_specs=[pl.BlockSpec((tile_r, _LANE_W), lambda i: (i, 0))],
            out_specs=pl.BlockSpec((tile_r, _LANE_W), lambda i: (i, 0)),
        ),
        compiler_params=pltpu.CompilerParams(
            dimension_semantics=("parallel",),   # shard row tiles across TCs on v7x
            vmem_limit_bytes=_VMEM_LIMIT,
        ),
        cost_estimate=pl.CostEstimate(
            flops=padded,
            transcendentals=0,
            bytes_accessed=2 * padded * itemsize,
        ),
    )(x2d)

    out_flat = out2d.reshape(-1)
    if padded != n:
        out_flat = out_flat[:n]
    return out_flat.reshape(orig_shape)


class AbstractOperatorPallas:
    """JAX/Pallas port of PyTorch-BigGraph AbstractOperator (identity forward)."""

    def __init__(self, dim: int):
        self.dim = dim  # no parameters for the base / identity operator

    def forward(self, embeddings: jnp.ndarray) -> jnp.ndarray:
        assert embeddings.shape[-1] == self.dim
        # Identity: returning the array is free -- no HBM round trip, no kernel.
        return embeddings

    def prepare_embs_for_reg(self, embs: jnp.ndarray) -> jnp.ndarray:
        assert embs.shape[-1] == self.dim
        return _abs_lane_dense(embs)


if __name__ == "__main__":
    dim = 32
    op = AbstractOperatorPallas(dim)

    key = jax.random.PRNGKey(0)
    # batch of 2 x seq of 8 vectors of size `dim`
    embs = jax.random.normal(key, (2, 8, dim), dtype=jnp.float32)

    fwd = op.forward(embs)
    reg = op.prepare_embs_for_reg(embs)
    jax.block_until_ready(fwd)
    jax.block_until_ready(reg)

    assert fwd.shape == embs.shape and reg.shape == embs.shape
    assert jnp.allclose(fwd, embs)
    assert jnp.allclose(reg, jnp.abs(embs))

    # Secondary check: exercise the multi-tile (pipelined) grid path.
    key2 = jax.random.PRNGKey(1)
    big = jax.random.normal(key2, (4096 * 5, dim), dtype=jnp.float32)  # rows > _TILE_R
    reg_big = op.prepare_embs_for_reg(big)
    jax.block_until_ready(reg_big)
    assert jnp.allclose(reg_big, jnp.abs(big))

    print("KERNEL_OK")
</pallas_src>

<mosaic_0001>
module attributes {stable_mosaic.version = 11 : i64} {
  func.func @_abs_kernel(%arg0: i32, %arg1: memref<1x1024xf32, #tpu.memory_space<vmem>>, %arg2: memref<1x1024xf32, #tpu.memory_space<vmem>>) attributes {dimension_semantics = [#tpu.dimension_semantics<parallel>], iteration_bounds = array<i64: 1>, scalar_prefetch = 0 : i64, scratch_operands = 0 : i64, tpu.core_type = #tpu.core_type<tc>, window_params = [{transform_indices = @transform_0, window_bounds = array<i64: 1, 1024>}, {transform_indices = @transform_1, window_bounds = array<i64: 1, 1024>}]} {
    %c0 = arith.constant 0 : index
    %c0_0 = arith.constant 0 : index
    %0 = vector.load %arg1[%c0, %c0_0] : memref<1x1024xf32, #tpu.memory_space<vmem>>, vector<1x1024xf32>
    %1 = math.absf %0 : vector<1x1024xf32>
    %c0_1 = arith.constant 0 : index
    %c0_2 = arith.constant 0 : index
    %2 = vector.load %arg2[%c0_1, %c0_2] : memref<1x1024xf32, #tpu.memory_space<vmem>>, vector<1x1024xf32>
    tpu.vector_store %arg2[%c0_1, %c0_2], %1 {strides = array<i32>} : memref<1x1024xf32, #tpu.memory_space<vmem>>, vector<1x1024xf32>,
    return
  }
  func.func @transform_0(%arg0: i32) -> (i32, i32) {
    %c0_i32 = arith.constant 0 : i32
    %c0_i32_0 = arith.constant 0 : i32
    return %arg0, %c0_i32 : i32, i32
  }
  func.func @transform_1(%arg0: i32) -> (i32, i32) {
    %c0_i32 = arith.constant 0 : i32
    %c0_i32_0 = arith.constant 0 : i32
    return %arg0, %c0_i32 : i32, i32
  }
}

</mosaic_0001>

<bundles_post_ra>
// kernel: tpu_custom_call.1
= control target key start
LH: loop header
LB: loop body
LE: loop exit
PB: predicated region body
PF: predicated region fallthrough
CT: control target
= control target key end

     0   :  { %6 = vsyncpa [#allocation3], 0  ;;  %s125_s0 = inlined_call_operand.hbm [shape: f32[1,1024], index: 0, kind: input, shape index: {}]   ;;  %s126_s1 = inlined_call_operand.hbm [shape: f32[1,1024], index: 1, kind: output, shape index: {}]  }
   0x1   :  { %7 = vsyncpa [#allocation4], 0  ;;  %s89_s6 = smov [#allocation2]   ;;  %s41_s10 = scalar_lea.hbm %s125_s0, 128 }
   0x2   :  { %s14_s7 = sshll.u32 %s89_s6, 4  ;;  %p42_p0 = scmp.ne.s32.totalorder %s125_s0, %s41_s10  ;;  %s15_s7 = int_to_ptr.vmem [resolvable:$true] %s14_s7 }
   0x3   :  { %p45_p1 = scmp.lt.u32.totalorder %s41_s10, %s125_s0 }
   0x5   :  { %p47_p2 = pnand %p45_p1, %p42_p0 }
   0x7   :  { %50 = shalt.err (!%p47_p2)
}
   0x8   :  { %s51_s15 = scalar_lea.vmem %s15_s7, 128  ;;  %p56_p4 = scmp.lt.s32.totalorder %s15_s7, %s15_s7 }
   0x9   :  { %p52_p3 = scmp.ne.s32.totalorder %s15_s7, %s51_s15  ;;  %p57_p5 = scmp.lt.s32.totalorder %s51_s15, %s51_s15 }
   0xb   :  { %p58_p6 = por %p57_p5, %p56_p4 }
   0xd   :  { %p59_p7 = pnand %p58_p6, %p52_p3 }
   0xf   :  { %62 = shalt.err (!%p59_p7)
}
  0x10   :  { %17 = dma.hbm_to_vmem [thread:$0]  %s125_s0, 128, %s15_s7, [#allocation3]  }
  0x11   :  { %85 = dma.done.wait [#allocation3], 128  }
  0x12   :  { %86 = vsyncadd [#allocation3], 4294967168  ;;  %s90_s18 = smov [#allocation5]   ;;  %v21_v0 = vld [vmem:[#allocation2] sm:$0xff] }
  0x13   :  { %s30_s19 = sshll.u32 %s90_s18, 4  ;;  %v22_v1 = vand.u32 2147483647, %v21_v0  ;;  %s31_s19 = int_to_ptr.vmem [resolvable:$true] %s30_s19 }
  0x14   :  { %s63_s20 = scalar_lea.vmem %s31_s19, 128  ;;  %p68_p9 = scmp.lt.s32.totalorder %s31_s19, %s31_s19 }
  0x15   :  { %23 = vst [vmem:[#allocation5] sm:$0xff] %v22_v1  ;;  %p64_p8 = scmp.ne.s32.totalorder %s31_s19, %s63_s20  ;;  %p69_p10 = scmp.lt.s32.totalorder %s63_s20, %s63_s20 }
  0x17   :  { %p70_p11 = por %p69_p10, %p68_p9 }
  0x19   :  { %p71_p12 = pnand %p70_p11, %p64_p8 }
  0x1b   :  { %74 = shalt.err (!%p71_p12)
}
  0x1c   :  { %s75_s23 = scalar_lea.hbm %s126_s1, 128 }
  0x1d   :  { %p76_p13 = scmp.ne.s32.totalorder %s126_s1, %s75_s23  ;;  %p79_p0 = scmp.lt.u32.totalorder %s75_s23, %s126_s1 }
  0x1f   :  { %p81_p1 = pnand %p79_p0, %p76_p13 }
  0x21   :  { %84 = shalt.err (!%p81_p1)
}
  0x22   :  { %33 = dma.vmem_to_hbm [thread:$0]  %s31_s19, 128, %s126_s1, [#allocation4]  }
  0x23   :  { %87 = dma.done.wait [#allocation4], 128  }
  0x24   :  { %88 = vsyncadd [#allocation4], 4294967168 }
  0x25   :  { %37 = vsyncpa [#allocation3], 1 }
  0x26   :  { %38 = vsyncpa [#allocation4], 1 }

</bundles_post_ra>
